<compile_context>
chip_gen: v5e
topology: v5e:2x2
jax: 0.10.0
libtpu: 0.0.40
codegen_flags: <defaults>
</compile_context>

<pallas_src>
import functools

import jax
import jax.numpy as jnp
from jax.experimental import pallas as pl
from jax.experimental.pallas import tpu as pltpu


# ----------------------------------------------------------------------------
# Kernel body
# ----------------------------------------------------------------------------
def _locked_dropout_kernel(x_ref, mask_ref, o_ref):
    # x_ref:    (Bb, TS, H) tile of the activation
    # mask_ref: (Bb, 1,  H) per-batch mask, broadcast over the seq tile
    o_ref[...] = x_ref[...] * mask_ref[...]


# ----------------------------------------------------------------------------
# Generation-aware tiling policy
# ----------------------------------------------------------------------------
def _device_tuning():
    """Returns (target_block_bytes, vmem_limit_bytes_or_None, force_two_steps)."""
    kind = ""
    try:
        kind = jax.devices()[0].device_kind.lower()
    except Exception:
        pass
    if ("v5 lite" in kind) or ("v5e" in kind) or ("v5lite" in kind):
        # v5e (~0.82 TB/s): per-step overhead already <10% at 2-3 MiB blocks and
        # the 16 MiB scoped-VMEM default binds; keep blocks modest, no limit bump.
        return 3 * 1024 * 1024, None, False
    if "7" in kind:
        # v7x (~3.2 TB/s, 64 MiB VMEM/TC, 2 TCs): bigger blocks matter most here.
        # 2 bufs x 8 MiB (x) + 2 bufs x 8 MiB (out) + mask  <= 48 MiB limit.
        return 8 * 1024 * 1024, 48 * 1024 * 1024, True
    # v6e and default/unknown: 8 MiB blocks, raise the 32 MiB scoped default.
    return 8 * 1024 * 1024, 48 * 1024 * 1024, False


def _choose_tiles(B, S, H, itemsize, batch_tile=None, seq_tile=None):
    """Pick (batch_block, seq_block, vmem_limit) for (B, S, H) activations."""
    target_bytes, vmem_limit, force_split = _device_tuning()
    sublane = max(8, 32 // itemsize)  # 8 for f32, 16 for bf16, 32 for int8
    row_bytes = H * itemsize
    slab_bytes = S * row_bytes  # one batch element

    if seq_tile is not None or batch_tile is not None:
        ts = min(S, seq_tile) if seq_tile is not None else S
        bb = min(B, batch_tile) if batch_tile is not None else 1
        return bb, ts, vmem_limit

    if slab_bytes >= target_bytes:
        # One batch element per block; tile the seq axis to ~target_bytes,
        # keeping TS a sublane-pack multiple (lane axis H already % 128).
        bb = 1
        ts = max(sublane, (target_bytes // max(1, row_bytes)) // sublane * sublane)
        ts = min(ts, S)
    else:
        # Small per-batch slab (typical RNN shapes): pack several batch elements
        # into one block so each grid step still moves a multi-MiB DMA.
        ts = S
        bb = min(B, max(1, target_bytes // max(1, slab_bytes)))

    # v7x has 2 TensorCores: make sure a parallel grid axis has >= 2 steps.
    if force_split and pl.cdiv(B, bb) * pl.cdiv(S, ts) < 2:
        if B >= 2:
            bb = pl.cdiv(B, 2)
        elif S >= 2 * sublane:
            ts = pl.cdiv(pl.cdiv(S, 2), sublane) * sublane

    return bb, ts, vmem_limit


# ----------------------------------------------------------------------------
# pallas_call builders
# ----------------------------------------------------------------------------
def _build_call(B, S, H, dtype, bb, ts, vmem_limit, alias_x):
    itemsize = jnp.dtype(dtype).itemsize
    grid = (pl.cdiv(B, bb), pl.cdiv(S, ts))
    cost = pl.CostEstimate(
        flops=B * S * H,
        transcendentals=0,
        bytes_accessed=2 * B * S * H * itemsize + B * H * itemsize,
    )
    extra = {"input_output_aliases": {0: 0}} if alias_x else {}
    return pl.pallas_call(
        _locked_dropout_kernel,
        out_shape=jax.ShapeDtypeStruct((B, S, H), dtype),
        grid=grid,
        in_specs=[
            pl.BlockSpec((bb, ts, H), lambda b, s: (b, s, 0)),
            # Block index constant along the inner seq axis -> mask tile stays
            # resident in VMEM across seq tiles instead of being re-fetched.
            pl.BlockSpec((bb, 1, H), lambda b, s: (b, 0, 0)),
        ],
        out_specs=pl.BlockSpec((bb, ts, H), lambda b, s: (b, s, 0)),
        compiler_params=pltpu.CompilerParams(
            dimension_semantics=("parallel", "parallel"),
            vmem_limit_bytes=vmem_limit,
        ),
        cost_estimate=cost,
        **extra,
    )


@functools.partial(jax.jit, static_argnames=("bb", "ts", "vmem_limit"))
def _ld_pallas(x, mask, bb, ts, vmem_limit):
    B, S, H = x.shape
    return _build_call(B, S, H, x.dtype, bb, ts, vmem_limit, alias_x=False)(x, mask)


@functools.partial(
    jax.jit, static_argnames=("bb", "ts", "vmem_limit"), donate_argnums=(0,)
)
def _ld_pallas_donated(x, mask, bb, ts, vmem_limit):
    # Output aliases x's HBM buffer (x is dead after LockedDropout in training).
    B, S, H = x.shape
    return _build_call(B, S, H, x.dtype, bb, ts, vmem_limit, alias_x=True)(x, mask)


_PALLAS_MIN_BYTES = 2 << 20  # below ~2 MiB, XLA's fused multiply wins everywhere


def locked_dropout_apply(
    x,
    mask,
    *,
    seq_tile=None,
    batch_tile=None,
    donate_x=False,
    min_bytes_for_pallas=_PALLAS_MIN_BYTES,
):
    """x: (B, S, H), mask: (B, 1, H). Returns mask * x broadcast over seq."""
    B, S, H = x.shape
    itemsize = jnp.dtype(x.dtype).itemsize
    # Lane-dense requirement (H % 128) + small-activation fallback: below the
    # threshold the launch/per-step overhead and lost XLA fusion make the plain
    # multiply strictly better on every generation.
    if H % 128 != 0 or B * S * H * itemsize < min_bytes_for_pallas:
        return x * mask
    bb, ts, vmem_limit = _choose_tiles(B, S, H, itemsize, batch_tile, seq_tile)
    fn = _ld_pallas_donated if donate_x else _ld_pallas
    return fn(x, mask, bb=bb, ts=ts, vmem_limit=vmem_limit)


# ----------------------------------------------------------------------------
# Module port
# ----------------------------------------------------------------------------
class LockedDropout:
    """JAX/Pallas port of the PyTorch LockedDropout module."""

    def __init__(self, hidden_size, num_layers=1, dropout=0.2):
        self.hidden_size = hidden_size
        self.num_layers = num_layers
        self.dropout = dropout
        self.training = True
        self.masks = []

    def sample_masks(self, x, key):
        """x: (bsize, seqlen, hidden). Samples num_layers-1 masks (bsize, 1, hidden)."""
        self.masks = []
        bsize = x.shape[0]
        keep = 1.0 - self.dropout
        for i in range(self.num_layers - 1):
            subkey = jax.random.fold_in(key, i)
            bern = jax.random.bernoulli(
                subkey, p=keep, shape=(bsize, 1, self.hidden_size)
            ).astype(jnp.float32)
            self.masks.append((bern / jnp.float32(keep)).astype(x.dtype))

    def __call__(self, x, layer=0):
        """x: bsize x seqlen x hidden_size"""
        if (not self.training) or self.dropout == 0.0 or layer == self.num_layers - 1:
            return x
        mask = self.masks[layer]
        return locked_dropout_apply(x, mask)


# ----------------------------------------------------------------------------
# Self-test
# ----------------------------------------------------------------------------
if __name__ == "__main__":
    key = jax.random.PRNGKey(0)
    k_x, k_mask, k_small = jax.random.split(key, 3)

    # Small but lane-dense shape (H multiple of 128).
    B, S, H = 4, 40, 256
    x = jax.random.normal(k_x, (B, S, H), dtype=jnp.float32)

    ld = LockedDropout(hidden_size=H, num_layers=2, dropout=0.2)
    ld.sample_masks(x, k_mask)
    mask0 = ld.masks[0]
    ref0 = jnp.broadcast_to(mask0, x.shape) * x

    # 1) Module path at this small size routes to the XLA fallback (by design).
    out_mod = jax.block_until_ready(ld(x, layer=0))
    assert jnp.allclose(out_mod, ref0, atol=1e-6), "mismatch (module/fallback path)"

    # 2) Forced Pallas path (auto tiling -> batch-packed (Bb, S, H) blocks).
    out_pallas = jax.block_until_ready(
        locked_dropout_apply(x, mask0, min_bytes_for_pallas=0)
    )
    assert jnp.allclose(out_pallas, ref0, atol=1e-6), "mismatch (pallas auto-tile)"

    # 3) Explicit seq tiling (TS=16, S=40 -> partial tail block) exercises the
    #    multi-step pipeline + masked partial-store path.
    out_tiled = jax.block_until_ready(
        locked_dropout_apply(
            x, mask0, seq_tile=16, batch_tile=1, min_bytes_for_pallas=0
        )
    )
    assert jnp.allclose(out_tiled, ref0, atol=1e-6), "mismatch (pallas seq-tiled)"

    # 4) Donated / input_output_aliases path (x_donor must not be reused after).
    x_donor = jnp.array(x)  # fresh buffer to donate
    out_donated = jax.block_until_ready(
        locked_dropout_apply(x_donor, mask0, donate_x=True, min_bytes_for_pallas=0)
    )
    assert jnp.allclose(out_donated, ref0, atol=1e-6), "mismatch (pallas donated)"

    # 5) Last layer: identity pass-through (matches PyTorch semantics).
    out_last = jax.block_until_ready(ld(x, layer=ld.num_layers - 1))
    assert jnp.array_equal(out_last, x)

    # 6) Tiny-H fallback path (H < 128 -> plain XLA multiply).
    Bs, Ss, Hs = 2, 8, 32
    xs = jax.random.normal(k_small, (Bs, Ss, Hs), dtype=jnp.float32)
    lds = LockedDropout(hidden_size=Hs, num_layers=2, dropout=0.2)
    lds.sample_masks(xs, k_mask)
    outs = jax.block_until_ready(lds(xs, layer=0))
    refs = jnp.broadcast_to(lds.masks[0], xs.shape) * xs
    assert jnp.allclose(outs, refs, atol=1e-6), "mismatch (tiny fallback)"

    print("KERNEL_OK")
</pallas_src>

<mosaic_0001>
module attributes {stable_mosaic.version = 11 : i64} {
  func.func @_locked_dropout_kernel(%arg0: i32, %arg1: i32, %arg2: memref<4x40x256xf32, #tpu.memory_space<vmem>>, %arg3: memref<4x1x256xf32, #tpu.memory_space<vmem>>, %arg4: memref<4x40x256xf32, #tpu.memory_space<vmem>>) attributes {dimension_semantics = [#tpu.dimension_semantics<parallel>, #tpu.dimension_semantics<parallel>], iteration_bounds = array<i64: 1, 1>, scalar_prefetch = 0 : i64, scratch_operands = 0 : i64, tpu.core_type = #tpu.core_type<tc>, window_params = [{transform_indices = @transform_0, window_bounds = array<i64: 4, 40, 256>}, {transform_indices = @transform_1, window_bounds = array<i64: 4, 1, 256>}, {transform_indices = @transform_2, window_bounds = array<i64: 4, 40, 256>}]} {
    %c0 = arith.constant 0 : index
    %c0_0 = arith.constant 0 : index
    %c0_1 = arith.constant 0 : index
    %0 = vector.load %arg2[%c0, %c0_0, %c0_1] : memref<4x40x256xf32, #tpu.memory_space<vmem>>, vector<4x40x256xf32>
    %c0_2 = arith.constant 0 : index
    %c0_3 = arith.constant 0 : index
    %c0_4 = arith.constant 0 : index
    %1 = vector.load %arg3[%c0_2, %c0_3, %c0_4] : memref<4x1x256xf32, #tpu.memory_space<vmem>>, vector<4x1x256xf32>
    %2 = vector.broadcast %1 : vector<4x1x256xf32> to vector<4x40x256xf32>
    %3 = arith.mulf %0, %2 : vector<4x40x256xf32>
    %c0_5 = arith.constant 0 : index
    %c0_6 = arith.constant 0 : index
    %c0_7 = arith.constant 0 : index
    %4 = vector.load %arg4[%c0_5, %c0_6, %c0_7] : memref<4x40x256xf32, #tpu.memory_space<vmem>>, vector<4x40x256xf32>
    tpu.vector_store %arg4[%c0_5, %c0_6, %c0_7], %3 {strides = array<i32>} : memref<4x40x256xf32, #tpu.memory_space<vmem>>, vector<4x40x256xf32>,
    return
  }
  func.func @transform_0(%arg0: i32, %arg1: i32) -> (i32, i32, i32) {
    %c0_i32 = arith.constant 0 : i32
    %c0_i32_0 = arith.constant 0 : i32
    return %arg0, %arg1, %c0_i32 : i32, i32, i32
  }
  func.func @transform_1(%arg0: i32, %arg1: i32) -> (i32, i32, i32) {
    %c0_i32 = arith.constant 0 : i32
    %c0_i32_0 = arith.constant 0 : i32
    %c0_i32_1 = arith.constant 0 : i32
    return %arg0, %c0_i32, %c0_i32_0 : i32, i32, i32
  }
  func.func @transform_2(%arg0: i32, %arg1: i32) -> (i32, i32, i32) {
    %c0_i32 = arith.constant 0 : i32
    %c0_i32_0 = arith.constant 0 : i32
    return %arg0, %arg1, %c0_i32 : i32, i32, i32
  }
}

</mosaic_0001>

<bundles_post_ra>
// kernel: _ld_pallas.1
= control target key start
LH: loop header
LB: loop body
LE: loop exit
PB: predicated region body
PF: predicated region fallthrough
CT: control target
= control target key end

     0   :  { %7 = vsyncpa [#allocation3], 0  ;;  %s330_s0 = inlined_call_operand.hbm [shape: f32[4,40,256], index: 0, kind: input, shape index: {}]   ;;  %s331_s1 = inlined_call_operand.hbm [shape: f32[4,1,256], index: 1, kind: input, shape index: {}]   ;;  %s332_s2 = inlined_call_operand.hbm [shape: f32[4,40,256], index: 2, kind: output, shape index: {}]  }
   0x1   :  { %8 = vsyncpa [#allocation6], 0 }
   0x2   :  { %9 = vsyncpa [#allocation4], 0  ;;  %s14_s11 = sshll.u32 %s330_s0, 4  ;;  %s293_s12 = smov [#allocation2]   ;;  %s15_s11 = int_to_ptr.hbm [resolvable:$true] %s14_s11 }
   0x3   :  { %s16_s13 = sshll.u32 %s293_s12, 4  ;;  %s27_s16 = sshll.u32 %s331_s1, 4  ;;  %s17_s13 = int_to_ptr.vmem [resolvable:$true] %s16_s13  ;;  %s28_s16 = int_to_ptr.hbm [resolvable:$true] %s27_s16 }
   0x4   :  { %s294_s17 = smov 256   ;;  %s295_s18 = smov 16  }
   0x5   :  { %22 = dma.hbm_to_vmem [thread:$0]  %s15_s11, 5120, %s17_s13, [#allocation3], %s294_s17, %s294_s17, %s295_s18  }
   0x6   :  { %s296_s19 = smov [#allocation5]   ;;  %s297_s21 = smov 32  }
   0x7   :  { %s29_s20 = sshll.u32 %s296_s19, 4  ;;  %s298_s0 = smov 2   ;;  %s30_s20 = int_to_ptr.vmem [resolvable:$true] %s29_s20 }
   0x8   :  { %35 = dma.hbm_to_vmem [thread:$0]  %s28_s16, 128, %s30_s20, [#allocation6], %s297_s21, %s297_s21, %s298_s0  }
   0x9   :  { %287 = dma.done.wait [#allocation3], 5120  }
   0xa   :  { %288 = vsyncadd [#allocation3], 4294962176 }
   0xb   :  { %289 = dma.done.wait [#allocation6], 128  }
   0xc   :  { %290 = vsyncadd [#allocation6], 4294967168  ;;  %v44_v0 = vld [vmem:[#allocation2] sm:$0xff]  ;;  %v45_v2 = vld [vmem:[#allocation2 + $0x8] sm:$0xff]  ;;  %s299_s1 = smov [#allocation7]   ;;  %s194_s25 = sshll.u32 %s332_s2, 4  ;;  %s195_s25 = int_to_ptr.hbm [resolvable:$true] %s194_s25 }
   0xd   :  { %v84_v1 = vld [vmem:[#allocation5] sm:$0x3]  ;;  %v46_v5 = vld [vmem:[#allocation2 + $0x10] sm:$0xff]  ;;  %v47_v6 = vld [vmem:[#allocation2 + $0x18] sm:$0xff]  ;;  %s192_s22 = sshll.u32 %s299_s1, 4  ;;  %s193_s22 = int_to_ptr.vmem [resolvable:$true] %s192_s22 }
   0xe   :  { %v92_v3 = vperm.slane %v84_v1, 0  ;;  %v93_v4 = vperm.slane %v84_v1, 1  ;;  %v48_v7 = vld [vmem:[#allocation2 + $0x20] sm:$0xff]  ;;  %v49_v11 = vld [vmem:[#allocation2 + $0x28] sm:$0xff]  ;;  %v50_v13 = vld [vmem:[#allocation2 + $0x30] sm:$0xff] }
   0xf   :  { %v85_v14 = vld [vmem:[#allocation5 + $0x2] sm:$0x3]  ;;  %v51_v16 = vld [vmem:[#allocation2 + $0x38] sm:$0xff]  ;;  %v53_v20 = vld [vmem:[#allocation2 + $0x48] sm:$0xff] }
  0x10   :  { %v108_v8 = vmul.f32 %v92_v3, %v44_v0  ;;  %v109_v9 = vmul.f32 %v93_v4, %v45_v2  ;;  %v110_v10 = vmul.f32 %v92_v3, %v46_v5  ;;  %v111_v12 = vmul.f32 %v93_v4, %v47_v6  ;;  %v52_v18 = vld [vmem:[#allocation2 + $0x40] sm:$0xff]  ;;  %v54_v23 = vld [vmem:[#allocation2 + $0x50] sm:$0xff]  ;;  %v55_v26 = vld [vmem:[#allocation2 + $0x58] sm:$0xff] }
  0x11   :  { %v112_v15 = vmul.f32 %v92_v3, %v48_v7  ;;  %v113_v17 = vmul.f32 %v93_v4, %v49_v11  ;;  %v114_v19 = vmul.f32 %v92_v3, %v50_v13  ;;  %v94_v21 = vperm.slane %v85_v14, 0  ;;  %v56_v28 = vld [vmem:[#allocation2 + $0x60] sm:$0xff]  ;;  %v57_v30 = vld [vmem:[#allocation2 + $0x68] sm:$0xff]  ;;  %v58_v32 = vld [vmem:[#allocation2 + $0x70] sm:$0xff] }
  0x12   :  { %148 = vst [vmem:[#allocation7] sm:$0xff] %v108_v8  ;;  %v115_v22 = vmul.f32 %v93_v4, %v51_v16  ;;  %v95_v24 = vperm.slane %v85_v14, 1  ;;  %v116_v25 = vmul.f32 %v92_v3, %v52_v18  ;;  %v117_v27 = vmul.f32 %v93_v4, %v53_v20  ;;  %v59_v34 = vld [vmem:[#allocation2 + $0x78] sm:$0xff]  ;;  %v60_v36 = vld [vmem:[#allocation2 + $0x80] sm:$0xff]  ;;  %v61_v39 = vld [vmem:[#allocation2 + $0x88] sm:$0xff] }
  0x13   :  { %149 = vst [vmem:[#allocation7 + $0x8] sm:$0xff] %v109_v9  ;;  %v118_v29 = vmul.f32 %v94_v21, %v54_v23  ;;  %v120_v33 = vmul.f32 %v94_v21, %v56_v28  ;;  %v86_v37 = vld [vmem:[#allocation5 + $0x4] sm:$0x3]  ;;  %v122_v38 = vmul.f32 %v94_v21, %v58_v32  ;;  %v62_v41 = vld [vmem:[#allocation2 + $0x90] sm:$0xff]  ;;  %v124_v42 = vmul.f32 %v94_v21, %v60_v36  ;;  %v63_v43 = vld [vmem:[#allocation2 + $0x98] sm:$0xff] }
  0x14   :  { %150 = vst [vmem:[#allocation7 + $0x10] sm:$0xff] %v110_v10  ;;  %v119_v31 = vmul.f32 %v95_v24, %v55_v26  ;;  %v121_v35 = vmul.f32 %v95_v24, %v57_v30  ;;  %v123_v40 = vmul.f32 %v95_v24, %v59_v34  ;;  %v96_v44 = vperm.slane %v86_v37, 0  ;;  %v64_v46 = vld [vmem:[#allocation2 + $0xa0] sm:$0xff]  ;;  %v65_v49 = vld [vmem:[#allocation2 + $0xa8] sm:$0xff]  ;;  %v66_v51 = vld [vmem:[#allocation2 + $0xb0] sm:$0xff] }
  0x15   :  { %151 = vst [vmem:[#allocation7 + $0x18] sm:$0xff] %v111_v12  ;;  %v125_v45 = vmul.f32 %v95_v24, %v61_v39  ;;  %v97_v47 = vperm.slane %v86_v37, 1  ;;  %v126_v48 = vmul.f32 %v94_v21, %v62_v41  ;;  %v127_v50 = vmul.f32 %v95_v24, %v63_v43  ;;  %v67_v53 = vld [vmem:[#allocation2 + $0xb8] sm:$0xff]  ;;  %v68_v55 = vld [vmem:[#allocation2 + $0xc0] sm:$0xff]  ;;  %v69_v57 = vld [vmem:[#allocation2 + $0xc8] sm:$0xff] }
  0x16   :  { %152 = vst [vmem:[#allocation7 + $0x20] sm:$0xff] %v112_v15  ;;  %v128_v52 = vmul.f32 %v96_v44, %v64_v46  ;;  %v130_v56 = vmul.f32 %v96_v44, %v66_v51  ;;  %v70_v59 = vld [vmem:[#allocation2 + $0xd0] sm:$0xff]  ;;  %v87_v60 = vld [vmem:[#allocation5 + $0x6] sm:$0x3]  ;;  %v132_v61 = vmul.f32 %v96_v44, %v68_v55  ;;  %v71_v62 = vld [vmem:[#allocation2 + $0xd8] sm:$0xff] }
  0x17   :  { %153 = vst [vmem:[#allocation7 + $0x28] sm:$0xff] %v113_v17  ;;  %v129_v54 = vmul.f32 %v97_v47, %v65_v49  ;;  %v131_v58 = vmul.f32 %v97_v47, %v67_v53  ;;  %v133_v63 = vmul.f32 %v97_v47, %v69_v57  ;;  %v72_v0 = vld [vmem:[#allocation2 + $0xe0] sm:$0xff]  ;;  %v134_v1 = vmul.f32 %v96_v44, %v70_v59  ;;  %v73_v2 = vld [vmem:[#allocation2 + $0xe8] sm:$0xff]  ;;  %v74_v5 = vld [vmem:[#allocation2 + $0xf0] sm:$0xff] }
  0x18   :  { %154 = vst [vmem:[#allocation7 + $0x30] sm:$0xff] %v114_v19  ;;  %v98_v3 = vperm.slane %v87_v60, 0  ;;  %v135_v4 = vmul.f32 %v97_v47, %v71_v62  ;;  %v99_v6 = vperm.slane %v87_v60, 1  ;;  %v136_v7 = vmul.f32 %v96_v44, %v72_v0  ;;  %v75_v8 = vld [vmem:[#allocation2 + $0xf8] sm:$0xff]  ;;  %v76_v10 = vld [vmem:[#allocation2 + $0x100] sm:$0xff]  ;;  %v77_v12 = vld [vmem:[#allocation2 + $0x108] sm:$0xff] }
  0x19   :  { %155 = vst [vmem:[#allocation7 + $0x38] sm:$0xff] %v115_v22  ;;  %v137_v9 = vmul.f32 %v97_v47, %v73_v2  ;;  %v78_v14 = vld [vmem:[#allocation2 + $0x110] sm:$0xff]  ;;  %v79_v16 = vld [vmem:[#allocation2 + $0x118] sm:$0xff]  ;;  %v80_v18 = vld [vmem:[#allocation2 + $0x120] sm:$0xff] }
  0x1a   :  { %156 = vst [vmem:[#allocation7 + $0x40] sm:$0xff] %v116_v25  ;;  %v138_v11 = vmul.f32 %v98_v3, %v74_v5  ;;  %v139_v13 = vmul.f32 %v99_v6, %v75_v8  ;;  %v140_v15 = vmul.f32 %v98_v3, %v76_v10  ;;  %v141_v17 = vmul.f32 %v99_v6, %v77_v12  ;;  %v81_v20 = vld [vmem:[#allocation2 + $0x128] sm:$0xff]  ;;  %v82_v22 = vld [vmem:[#allocation2 + $0x130] sm:$0xff]  ;;  %v83_v24 = vld [vmem:[#allocation2 + $0x138] sm:$0xff] }
  0x1b   :  { %157 = vst [vmem:[#allocation7 + $0x48] sm:$0xff] %v117_v27  ;;  %v142_v19 = vmul.f32 %v98_v3, %v78_v14  ;;  %v143_v21 = vmul.f32 %v99_v6, %v79_v16  ;;  %v144_v23 = vmul.f32 %v98_v3, %v80_v18  ;;  %v145_v25 = vmul.f32 %v99_v6, %v81_v20 }
  0x1c   :  { %158 = vst [vmem:[#allocation7 + $0x50] sm:$0xff] %v118_v29  ;;  %v146_v26 = vmul.f32 %v98_v3, %v82_v22  ;;  %v147_v27 = vmul.f32 %v99_v6, %v83_v24 }
  0x1d   :  { %159 = vst [vmem:[#allocation7 + $0x58] sm:$0xff] %v119_v31 }
  0x1e   :  { %160 = vst [vmem:[#allocation7 + $0x60] sm:$0xff] %v120_v33 }
  0x1f   :  { %161 = vst [vmem:[#allocation7 + $0x68] sm:$0xff] %v121_v35 }
  0x20   :  { %162 = vst [vmem:[#allocation7 + $0x70] sm:$0xff] %v122_v38 }
  0x21   :  { %163 = vst [vmem:[#allocation7 + $0x78] sm:$0xff] %v123_v40 }
  0x22   :  { %164 = vst [vmem:[#allocation7 + $0x80] sm:$0xff] %v124_v42 }
  0x23   :  { %165 = vst [vmem:[#allocation7 + $0x88] sm:$0xff] %v125_v45 }
  0x24   :  { %166 = vst [vmem:[#allocation7 + $0x90] sm:$0xff] %v126_v48 }
  0x25   :  { %167 = vst [vmem:[#allocation7 + $0x98] sm:$0xff] %v127_v50 }
  0x26   :  { %168 = vst [vmem:[#allocation7 + $0xa0] sm:$0xff] %v128_v52 }
  0x27   :  { %169 = vst [vmem:[#allocation7 + $0xa8] sm:$0xff] %v129_v54 }
  0x28   :  { %170 = vst [vmem:[#allocation7 + $0xb0] sm:$0xff] %v130_v56 }
  0x29   :  { %171 = vst [vmem:[#allocation7 + $0xb8] sm:$0xff] %v131_v58 }
  0x2a   :  { %172 = vst [vmem:[#allocation7 + $0xc0] sm:$0xff] %v132_v61 }
  0x2b   :  { %173 = vst [vmem:[#allocation7 + $0xc8] sm:$0xff] %v133_v63 }
  0x2c   :  { %174 = vst [vmem:[#allocation7 + $0xd0] sm:$0xff] %v134_v1 }
  0x2d   :  { %175 = vst [vmem:[#allocation7 + $0xd8] sm:$0xff] %v135_v4 }
  0x2e   :  { %176 = vst [vmem:[#allocation7 + $0xe0] sm:$0xff] %v136_v7 }
  0x2f   :  { %177 = vst [vmem:[#allocation7 + $0xe8] sm:$0xff] %v137_v9 }
  0x30   :  { %178 = vst [vmem:[#allocation7 + $0xf0] sm:$0xff] %v138_v11 }
  0x31   :  { %179 = vst [vmem:[#allocation7 + $0xf8] sm:$0xff] %v139_v13 }
  0x32   :  { %180 = vst [vmem:[#allocation7 + $0x100] sm:$0xff] %v140_v15 }
  0x33   :  { %181 = vst [vmem:[#allocation7 + $0x108] sm:$0xff] %v141_v17 }
  0x34   :  { %182 = vst [vmem:[#allocation7 + $0x110] sm:$0xff] %v142_v19 }
  0x35   :  { %183 = vst [vmem:[#allocation7 + $0x118] sm:$0xff] %v143_v21 }
  0x36   :  { %184 = vst [vmem:[#allocation7 + $0x120] sm:$0xff] %v144_v23 }
  0x37   :  { %185 = vst [vmem:[#allocation7 + $0x128] sm:$0xff] %v145_v25 }
  0x38   :  { %186 = vst [vmem:[#allocation7 + $0x130] sm:$0xff] %v146_v26 }
  0x39   :  { %187 = vst [vmem:[#allocation7 + $0x138] sm:$0xff] %v147_v27 }
  0x3a   :  { %200 = dma.vmem_to_hbm [thread:$0]  %s193_s22, 5120, %s195_s25, [#allocation4], %s294_s17, %s294_s17, %s295_s18  }
  0x3b   :  { %291 = dma.done.wait [#allocation4], 5120  }
  0x3c   :  { %292 = vsyncadd [#allocation4], 4294962176 }
  0x3d   :  { %205 = vsyncpa [#allocation3], 1 }
  0x3e   :  { %206 = vsyncpa [#allocation6], 1 }
  0x3f   :  { %207 = vsyncpa [#allocation4], 1 }

</bundles_post_ra>
